<compile_context>
chip_gen: v7x
topology: tpu7x:2x2x1
jax: 0.10.0
libtpu: 0.0.40
codegen_flags: <defaults>
</compile_context>

<pallas_src>
import jax
import jax.numpy as jnp
from jax.experimental import pallas as pl
from jax.experimental.pallas import tpu as pltpu


def _round_up(x, m):
    return ((x + m - 1) // m) * m


def _vmem_budget_bytes():
    """~75% of this generation's physical VMEM (per TensorCore)."""
    cap = 64 * 1024 * 1024  # conservative fallback (v7x per-TC VMEM)
    try:
        info = pltpu.get_tpu_info()
        cap = int(getattr(info, "vmem_capacity_bytes", cap) or cap)
    except Exception:
        pass
    return max((cap * 3) // 4, 32 * 1024 * 1024)


def _make_fullc_kernel(tile_m, n_valid, targets_sum_to_one):
    """Path A: one block spans the whole class axis; per-tile scalar partial."""

    def kernel(x_ref, t_ref, o_ref):
        # inline the upcast at each use (no materialized full f32 tile copy)
        xf = lambda: x_ref[...].astype(jnp.float32)
        tf = lambda: t_ref[...].astype(jnp.float32)

        m = jnp.max(xf(), axis=1, keepdims=True)
        lse = jnp.log(jnp.sum(jnp.exp(xf() - m), axis=1, keepdims=True))

        if targets_sum_to_one:
            # skip the sum(t) pass; mask zero-padded tail rows explicitly
            row = pl.program_id(0) * tile_m + jax.lax.broadcasted_iota(
                jnp.int32, (tile_m, 1), 0)
            t_sum = (row < n_valid).astype(jnp.float32)
        else:
            t_sum = jnp.sum(tf(), axis=1, keepdims=True)
        tx_sum = jnp.sum(tf() * xf(), axis=1, keepdims=True)

        # sum_c t * -log_softmax(x) = sum_c(t) * (m + lse) - sum_c(t * x)
        partial = jnp.sum(t_sum * (m + lse) - tx_sum)
        o_ref[...] = jnp.full(o_ref.shape, partial, dtype=jnp.float32)

    return kernel


def _make_ctiled_kernel(tile_m, n_valid, targets_sum_to_one):
    """Path B: class-tiled online-logsumexp, grid = (row_tiles, class_tiles)."""

    def kernel(x_ref, t_ref, o_ref, m_sc, l_sc, ts_sc, txs_sc):
        j = pl.program_id(1)

        @pl.when(j == 0)
        def _():
            m_sc[...] = jnp.full_like(m_sc, -1e30)
            l_sc[...] = jnp.zeros_like(l_sc)
            txs_sc[...] = jnp.zeros_like(txs_sc)
            if not targets_sum_to_one:
                ts_sc[...] = jnp.zeros_like(ts_sc)

        xf = lambda: x_ref[...].astype(jnp.float32)
        tf = lambda: t_ref[...].astype(jnp.float32)

        m_prev = m_sc[...]
        m_new = jnp.maximum(m_prev, jnp.max(xf(), axis=1, keepdims=True))
        alpha = jnp.exp(m_prev - m_new)
        l_sc[...] = alpha * l_sc[...] + jnp.sum(
            jnp.exp(xf() - m_new), axis=1, keepdims=True)
        txs_sc[...] = txs_sc[...] + jnp.sum(tf() * xf(), axis=1, keepdims=True)
        if not targets_sum_to_one:
            ts_sc[...] = ts_sc[...] + jnp.sum(tf(), axis=1, keepdims=True)
        m_sc[...] = m_new

        @pl.when(j == pl.num_programs(1) - 1)
        def _():
            if targets_sum_to_one:
                row = pl.program_id(0) * tile_m + jax.lax.broadcasted_iota(
                    jnp.int32, (tile_m, 1), 0)
                t_sum = (row < n_valid).astype(jnp.float32)
            else:
                t_sum = ts_sc[...]
            row_loss = t_sum * (m_sc[...] + jnp.log(l_sc[...])) - txs_sc[...]
            o_ref[...] = jnp.full(o_ref.shape, jnp.sum(row_loss),
                                  dtype=jnp.float32)

    return kernel


def soft_cross_entropy(inputs, target, *, tile_m=None, tile_c=None,
                       targets_sum_to_one=False):
    """Returns sum(-log_softmax(inputs, axis=1) * target) / N as a float32 scalar.

    targets_sum_to_one=True skips the sum(target) reduction (valid only when every
    target row sums to 1, e.g. soft labels / one-hot).
    tile_c forces the class-tiled (online-logsumexp) path; it is chosen
    automatically when C is too large for a single VMEM-resident block.
    """
    N, C = inputs.shape
    assert target.shape == (N, C)

    itemsize = max(jnp.dtype(inputs.dtype).itemsize,
                   jnp.dtype(target.dtype).itemsize)
    budget = _vmem_budget_bytes()
    slack = 2 * 1024 * 1024
    # per (row, lane-column) cost: 2 inputs x 2 pipeline buffers of I/O dtype
    # + ~4 f32 intermediates (upcasts, exp(x-m), t*x) for large tiles
    per_col = 4 * itemsize + 4 * 4
    c_lanes = _round_up(C, 128)          # lane-padded VMEM layout width
    n_rounded = _round_up(N, 8)

    rows_fullc = max(0, (budget - slack) // (c_lanes * per_col))
    use_ctiled = (tile_c is not None) or (rows_fullc < 64)

    if not use_ctiled:
        # -------- path A: one block spans the full class axis --------
        if tile_m is None:
            tile_m = min(8192, rows_fullc)
        tile_m = max(8, min(_round_up(tile_m, 8), n_rounded))

        num_tiles = pl.cdiv(N, tile_m)
        n_pad = num_tiles * tile_m
        if n_pad != N:
            # zero-padded tail rows have zero targets -> contribute exactly 0
            inputs = jnp.pad(inputs, ((0, n_pad - N), (0, 0)))
            target = jnp.pad(target, ((0, n_pad - N), (0, 0)))

        partials = pl.pallas_call(
            _make_fullc_kernel(tile_m, N, targets_sum_to_one),
            out_shape=jax.ShapeDtypeStruct((num_tiles, 8, 128), jnp.float32),
            grid_spec=pltpu.PrefetchScalarGridSpec(
                num_scalar_prefetch=0,
                grid=(num_tiles,),
                in_specs=[
                    pl.BlockSpec((tile_m, C), lambda i: (i, 0)),
                    pl.BlockSpec((tile_m, C), lambda i: (i, 0)),
                ],
                out_specs=pl.BlockSpec((1, 8, 128), lambda i: (i, 0, 0)),
            ),
            compiler_params=pltpu.CompilerParams(
                dimension_semantics=("parallel",),
                vmem_limit_bytes=budget,
            ),
        )(inputs, target)
    else:
        # -------- path B: class-tiled online-logsumexp --------
        if tile_c is None:
            tile_c = 2048
        tile_c = max(128, min(_round_up(tile_c, 128), c_lanes))

        # per-row cost: tile_c I/O + f32 intermediates, plus 4 lane-padded (.,1)
        # f32 scratch rows (running max / sumexp / sum(t) / sum(t*x))
        per_row = tile_c * per_col + 4 * 128 * 4
        rows_ct = max(8, (budget - slack) // per_row)
        if tile_m is None:
            tile_m = min(8192, rows_ct)
        tile_m = max(8, min(_round_up(tile_m, 8), n_rounded))

        num_row_tiles = pl.cdiv(N, tile_m)
        num_class_tiles = pl.cdiv(C, tile_c)
        n_pad = num_row_tiles * tile_m
        c_pad = num_class_tiles * tile_c
        if c_pad != C:
            # padded class columns: very negative logits -> exp() contributes 0,
            # zero targets -> contribute 0 to sum(t) and sum(t*x)
            inputs = jnp.pad(inputs, ((0, 0), (0, c_pad - C)),
                             constant_values=-1e30)
            target = jnp.pad(target, ((0, 0), (0, c_pad - C)))
        if n_pad != N:
            inputs = jnp.pad(inputs, ((0, n_pad - N), (0, 0)))
            target = jnp.pad(target, ((0, n_pad - N), (0, 0)))

        partials = pl.pallas_call(
            _make_ctiled_kernel(tile_m, N, targets_sum_to_one),
            out_shape=jax.ShapeDtypeStruct((num_row_tiles, 8, 128), jnp.float32),
            grid_spec=pltpu.PrefetchScalarGridSpec(
                num_scalar_prefetch=0,
                grid=(num_row_tiles, num_class_tiles),
                in_specs=[
                    pl.BlockSpec((tile_m, tile_c), lambda i, j: (i, j)),
                    pl.BlockSpec((tile_m, tile_c), lambda i, j: (i, j)),
                ],
                out_specs=pl.BlockSpec((1, 8, 128), lambda i, j: (i, 0, 0)),
                scratch_shapes=[pltpu.VMEM((tile_m, 1), jnp.float32)] * 4,
            ),
            compiler_params=pltpu.CompilerParams(
                dimension_semantics=("parallel", "arbitrary"),
                vmem_limit_bytes=budget,
            ),
        )(inputs, target)

    # Final tiny reduction + divide-by-N in plain JAX. With multi-MiB tiles the
    # number of tiles is small, so the strided [:, 0, 0] gather is negligible.
    return jnp.sum(partials[:, 0, 0]) / jnp.float32(N)


if __name__ == "__main__":
    key = jax.random.PRNGKey(0)
    ks = jax.random.split(key, 10)

    def ref_loss(x, t):
        return jnp.sum(-jax.nn.log_softmax(x.astype(jnp.float32), axis=1)
                       * t.astype(jnp.float32)) / x.shape[0]

    # 1) small shapes consistent with the module: batch=16, classes=32 (path A)
    N, C = 16, 32
    x1 = jax.random.normal(ks[0], (N, C), dtype=jnp.float32)
    t1 = jax.nn.softmax(jax.random.normal(ks[1], (N, C), dtype=jnp.float32), axis=1)
    l1 = jax.block_until_ready(soft_cross_entropy(x1, t1))
    assert jnp.allclose(l1, ref_loss(x1, t1), rtol=1e-5, atol=1e-5), (l1, ref_loss(x1, t1))

    # 2) batch not a multiple of 8 -> zero-padded tail rows (path A)
    N2, C2 = 10, 32
    x2 = jax.random.normal(ks[2], (N2, C2), dtype=jnp.float32)
    t2 = jax.nn.softmax(jax.random.normal(ks[3], (N2, C2), dtype=jnp.float32), axis=1)
    l2 = jax.block_until_ready(soft_cross_entropy(x2, t2))
    assert jnp.allclose(l2, ref_loss(x2, t2), rtol=1e-5, atol=1e-5), (l2, ref_loss(x2, t2))

    # 3) targets_sum_to_one fast path with a ragged batch (exercises the row mask)
    l3 = jax.block_until_ready(soft_cross_entropy(x2, t2, targets_sum_to_one=True))
    assert jnp.allclose(l3, ref_loss(x2, t2), rtol=1e-4, atol=1e-4), (l3, ref_loss(x2, t2))

    # 4) forced class-tiled online-logsumexp path (path B), C multiple of tile_c
    N4, C4 = 24, 384
    x4 = jax.random.normal(ks[4], (N4, C4), dtype=jnp.float32)
    t4 = jax.nn.softmax(jax.random.normal(ks[5], (N4, C4), dtype=jnp.float32), axis=1)
    l4 = jax.block_until_ready(soft_cross_entropy(x4, t4, tile_c=128))
    assert jnp.allclose(l4, ref_loss(x4, t4), rtol=1e-4, atol=1e-4), (l4, ref_loss(x4, t4))

    # 5) class-tiled path with ragged batch AND ragged class count (both paddings)
    N5, C5 = 10, 200
    x5 = jax.random.normal(ks[6], (N5, C5), dtype=jnp.float32)
    t5 = jax.nn.softmax(jax.random.normal(ks[7], (N5, C5), dtype=jnp.float32), axis=1)
    l5 = jax.block_until_ready(soft_cross_entropy(x5, t5, tile_c=128))
    assert jnp.allclose(l5, ref_loss(x5, t5), rtol=1e-4, atol=1e-4), (l5, ref_loss(x5, t5))

    print("KERNEL_OK")
</pallas_src>

<mosaic_0001>
module attributes {stable_mosaic.version = 11 : i64} {
  func.func @kernel(%arg0: i32, %arg1: memref<16x32xf32, #tpu.memory_space<vmem>>, %arg2: memref<16x32xf32, #tpu.memory_space<vmem>>, %arg3: memref<1x8x128xf32, #tpu.memory_space<vmem>>) attributes {dimension_semantics = [#tpu.dimension_semantics<parallel>], iteration_bounds = array<i64: 1>, scalar_prefetch = 0 : i64, scratch_operands = 0 : i64, tpu.core_type = #tpu.core_type<tc>, window_params = [{transform_indices = @transform_0, window_bounds = array<i64: 16, 32>}, {transform_indices = @transform_1, window_bounds = array<i64: 16, 32>}, {transform_indices = @transform_2, window_bounds = array<i64: 1, 8, 128>}]} {
    %c0 = arith.constant 0 : index
    %c0_0 = arith.constant 0 : index
    %0 = vector.load %arg1[%c0, %c0_0] : memref<16x32xf32, #tpu.memory_space<vmem>>, vector<16x32xf32>
    %cst = arith.constant dense<0xFF800000> : vector<16xf32>
    %1 = vector.multi_reduction <maximumf>, %0, %cst [1] : vector<16x32xf32> to vector<16xf32>
    %2 = vector.shape_cast %1 : vector<16xf32> to vector<16x1xf32>
    %c0_1 = arith.constant 0 : index
    %c0_2 = arith.constant 0 : index
    %3 = vector.load %arg1[%c0_1, %c0_2] : memref<16x32xf32, #tpu.memory_space<vmem>>, vector<16x32xf32>
    %4 = vector.broadcast %2 : vector<16x1xf32> to vector<16x32xf32>
    %5 = arith.subf %3, %4 : vector<16x32xf32>
    %6 = math.exp %5 : vector<16x32xf32>
    %cst_3 = arith.constant dense<0.000000e+00> : vector<16xf32>
    %7 = vector.multi_reduction <add>, %6, %cst_3 [1] : vector<16x32xf32> to vector<16xf32>
    %8 = vector.shape_cast %7 : vector<16xf32> to vector<16x1xf32>
    %9 = math.log %8 : vector<16x1xf32>
    %c0_4 = arith.constant 0 : index
    %c0_5 = arith.constant 0 : index
    %10 = vector.load %arg2[%c0_4, %c0_5] : memref<16x32xf32, #tpu.memory_space<vmem>>, vector<16x32xf32>
    %cst_6 = arith.constant dense<0.000000e+00> : vector<16xf32>
    %11 = vector.multi_reduction <add>, %10, %cst_6 [1] : vector<16x32xf32> to vector<16xf32>
    %12 = vector.shape_cast %11 : vector<16xf32> to vector<16x1xf32>
    %c0_7 = arith.constant 0 : index
    %c0_8 = arith.constant 0 : index
    %13 = vector.load %arg2[%c0_7, %c0_8] : memref<16x32xf32, #tpu.memory_space<vmem>>, vector<16x32xf32>
    %c0_9 = arith.constant 0 : index
    %c0_10 = arith.constant 0 : index
    %14 = vector.load %arg1[%c0_9, %c0_10] : memref<16x32xf32, #tpu.memory_space<vmem>>, vector<16x32xf32>
    %15 = arith.mulf %13, %14 : vector<16x32xf32>
    %cst_11 = arith.constant dense<0.000000e+00> : vector<16xf32>
    %16 = vector.multi_reduction <add>, %15, %cst_11 [1] : vector<16x32xf32> to vector<16xf32>
    %17 = vector.shape_cast %16 : vector<16xf32> to vector<16x1xf32>
    %18 = arith.addf %2, %9 : vector<16x1xf32>
    %19 = arith.mulf %12, %18 : vector<16x1xf32>
    %20 = arith.subf %19, %17 : vector<16x1xf32>
    %21 = vector.shape_cast %20 : vector<16x1xf32> to vector<1x16x1xf32>
    %cst_12 = arith.constant dense<0.000000e+00> : vector<1xf32>
    %22 = vector.multi_reduction <add>, %21, %cst_12 [1, 2] : vector<1x16x1xf32> to vector<1xf32>
    %23 = vector.shape_cast %22 : vector<1xf32> to vector<1x1x1xf32>
    %24 = vector.extract %23[0, 0, 0] : f32 from vector<1x1x1xf32>
    %25 = vector.broadcast %24 : f32 to vector<1x8x128xf32>
    %c0_13 = arith.constant 0 : index
    %c0_14 = arith.constant 0 : index
    %c0_15 = arith.constant 0 : index
    %26 = vector.load %arg3[%c0_13, %c0_14, %c0_15] : memref<1x8x128xf32, #tpu.memory_space<vmem>>, vector<1x8x128xf32>
    tpu.vector_store %arg3[%c0_13, %c0_14, %c0_15], %25 {strides = array<i32>} : memref<1x8x128xf32, #tpu.memory_space<vmem>>, vector<1x8x128xf32>,
    return
  }
  func.func @transform_0(%arg0: i32) -> (i32, i32) {
    %c0_i32 = arith.constant 0 : i32
    %c0_i32_0 = arith.constant 0 : i32
    return %arg0, %c0_i32 : i32, i32
  }
  func.func @transform_1(%arg0: i32) -> (i32, i32) {
    %c0_i32 = arith.constant 0 : i32
    %c0_i32_0 = arith.constant 0 : i32
    return %arg0, %c0_i32 : i32, i32
  }
  func.func @transform_2(%arg0: i32) -> (i32, i32, i32) {
    %c0_i32 = arith.constant 0 : i32
    %c0_i32_0 = arith.constant 0 : i32
    %c0_i32_1 = arith.constant 0 : i32
    return %arg0, %c0_i32, %c0_i32_0 : i32, i32, i32
  }
}

</mosaic_0001>

<bundles_post_ra>
// kernel: tpu_custom_call.1
= control target key start
LH: loop header
LB: loop body
LE: loop exit
PB: predicated region body
PF: predicated region fallthrough
CT: control target
= control target key end

     0   :  { %7 = vsyncpa [#allocation3], 0  ;;  %s269_s0 = inlined_call_operand.hbm [shape: f32[16,32], index: 0, kind: input, shape index: {}]   ;;  %s270_s1 = inlined_call_operand.hbm [shape: f32[16,32], index: 1, kind: input, shape index: {}]   ;;  %s271_s2 = inlined_call_operand.hbm [shape: f32[1,8,128], index: 2, kind: output, shape index: {}]  }
   0x1   :  { %8 = vsyncpa [#allocation6], 0 }
   0x2   :  { %9 = vsyncpa [#allocation4], 0  ;;  %s205_s9 = smov [#allocation2]   ;;  %s133_s13 = scalar_lea.hbm %s269_s0, 256 }
   0x3   :  { %s15_s10 = sshll.u32 %s205_s9, 4  ;;  %p134_p0 = scmp.ne.s32.totalorder %s269_s0, %s133_s13  ;;  %s16_s10 = int_to_ptr.vmem [resolvable:$true] %s15_s10 }
   0x4   :  { %p137_p1 = scmp.lt.u32.totalorder %s133_s13, %s269_s0 }
   0x6   :  { %p139_p2 = pnand %p137_p1, %p134_p0 }
   0x8   :  { %142 = shalt.err (!%p139_p2)
}
   0x9   :  { %s143_s18 = scalar_lea.vmem %s16_s10, 256  ;;  %p148_p4 = scmp.lt.s32.totalorder %s16_s10, %s16_s10 }
   0xa   :  { %p144_p3 = scmp.ne.s32.totalorder %s16_s10, %s143_s18  ;;  %p149_p5 = scmp.lt.s32.totalorder %s143_s18, %s143_s18 }
   0xc   :  { %p150_p6 = por %p149_p5, %p148_p4 }
   0xe   :  { %p151_p7 = pnand %p150_p6, %p144_p3 }
  0x10   :  { %154 = shalt.err (!%p151_p7)
}
  0x11   :  { %s206_s19 = smov 128   ;;  %s207_s20 = smov 8  }
  0x12   :  { %21 = dma.hbm_to_vmem [thread:$0]  %s269_s0, 256, %s16_s10, [#allocation3], %s206_s19, %s206_s19, %s207_s20  }
  0x13   :  { %s208_s23 = smov [#allocation5]   ;;  %s155_s27 = scalar_lea.hbm %s270_s1, 256 }
  0x14   :  { %s27_s24 = sshll.u32 %s208_s23, 4  ;;  %p156_p8 = scmp.ne.s32.totalorder %s270_s1, %s155_s27  ;;  %s28_s24 = int_to_ptr.vmem [resolvable:$true] %s27_s24 }
  0x15   :  { %p159_p9 = scmp.lt.u32.totalorder %s155_s27, %s270_s1 }
  0x17   :  { %p161_p10 = pnand %p159_p9, %p156_p8 }
  0x19   :  { %164 = shalt.err (!%p161_p10)
}
  0x1a   :  { %s165_s4 = scalar_lea.vmem %s28_s24, 256  ;;  %p170_p12 = scmp.lt.s32.totalorder %s28_s24, %s28_s24 }
  0x1b   :  { %p166_p11 = scmp.ne.s32.totalorder %s28_s24, %s165_s4  ;;  %p171_p13 = scmp.lt.s32.totalorder %s165_s4, %s165_s4 }
  0x1d   :  { %p172_p0 = por %p171_p13, %p170_p12 }
  0x1f   :  { %p173_p1 = pnand %p172_p0, %p166_p11 }
  0x21   :  { %176 = shalt.err (!%p173_p1)
}
  0x22   :  { %33 = dma.hbm_to_vmem [thread:$0]  %s270_s1, 256, %s28_s24, [#allocation6], %s206_s19, %s206_s19, %s207_s20  }
  0x23   :  { %199 = dma.done.wait [#allocation3], 256  }
  0x24   :  { %200 = vsyncadd [#allocation3], 4294967040 }
  0x25   :  { %201 = dma.done.wait [#allocation6], 256  }
  0x26   :  { %202 = vsyncadd [#allocation6], 4294967040  ;;  %vm42_vm0 = vcmask 261120   ;;  %v40_v0 = vld [vmem:[#allocation2] sm:$0xff]  ;;  %v41_v1 = vld [vmem:[#allocation2 + $0x8] sm:$0xff]  ;;  %vm87_vm1 = vcmask 7168  }
  0x27   :  { %v43_v2 = vsel %vm42_vm0, %v40_v0, -inf  ;;  %v46_v3 = vsel %vm42_vm0, %v41_v1, -inf  ;;  %v65_v4 = vld [vmem:[#allocation5] sm:$0xff]  ;;  %v66_v17 = vld [vmem:[#allocation5 + $0x8] sm:$0xff]  ;;  %s209_s1 = smov [#allocation7]  }
  0x28   :  { %44 = vmax.xlane.f32.xlu0 %v43_v2  ;;  %v67_v5 = vsel %vm42_vm0, %v65_v4, 0.0  ;;  %v73_v6 = vmul.f32 %v65_v4, %v40_v0  ;;  %v70_v19 = vsel %vm42_vm0, %v66_v17, 0.0  ;;  %v74_v20 = vmul.f32 %v66_v17, %v41_v1  ;;  %s108_s6 = sshll.u32 %s209_s1, 4  ;;  %s109_s6 = int_to_ptr.vmem [resolvable:$true] %s108_s6 }
  0x29   :  { %s177_s8 = scalar_lea.vmem %s109_s6, 128  ;;  %p182_p3 = scmp.lt.s32.totalorder %s109_s6, %s109_s6 }
  0x2a   :  { %v75_v7 = vsel %vm42_vm0, %v73_v6, 0.0  ;;  %v78_v21 = vsel %vm42_vm0, %v74_v20, 0.0  ;;  %p178_p2 = scmp.ne.s32.totalorder %s109_s6, %s177_s8  ;;  %p183_p4 = scmp.lt.s32.totalorder %s177_s8, %s177_s8 }
  0x2c   :  { %47 = vmax.xlane.f32.xlu0 %v46_v3  ;;  %p184_p5 = por %p183_p4, %p182_p3 }
  0x2e   :  { %p185_p6 = pnand %p184_p5, %p178_p2 }
  0x30   :  { %68 = vadd.xlane.f32.xlu0 %v67_v5 }
  0x34   :  { %76 = vadd.xlane.f32.xlu0 %v75_v7 }
  0xb5   :  { %v45_v8 = vpop.xlane.xlu0 %44 }
  0xb6   :  { %v49_v9 = vsub.f32 %v40_v0, %v45_v8 }
  0xb8   :  { %v51_v10 = vmul.f32 1.442695, %v49_v9 }
  0xb9   :  { %v48_v11 = vpop.xlane.xlu0 %47 }
  0xba   :  { %125 = vpow2.f32 %v51_v10  ;;  %v50_v12 = vsub.f32 %v41_v1, %v48_v11 }
  0xbc   :  { %v53_v13 = vmul.f32 1.442695, %v50_v12 }
  0xbd   :  { %v69_v25 = vpop.xlane.xlu0 %68 }
  0xbe   :  { %127 = vpow2.f32 %v53_v13 }
  0xc1   :  { %v77_v32 = vpop.xlane.xlu0 %76 }
  0xc4   :  { %v126_v14 = vpop.eup %125 }
  0xc5   :  { %v55_v15 = vsel %vm42_vm0, %v126_v14, 0.0 }
  0xc6   :  { %56 = vadd.xlane.f32.xlu1 %v55_v15 }
  0xc8   :  { %v128_v16 = vpop.eup %127 }
  0xc9   :  { %v58_v18 = vsel %vm42_vm0, %v128_v16, 0.0 }
  0xca   :  { %59 = vadd.xlane.f32.xlu1 %v58_v18 }
  0xce   :  { %71 = vadd.xlane.f32.xlu1 %v70_v19 }
  0xd2   :  { %79 = vadd.xlane.f32.xlu1 %v78_v21 }
 0x153   :  { %v57_v22 = vpop.xlane.xlu1 %56 }
 0x154   :  { %129 = vlog2.f32 %v57_v22 }
 0x157   :  { %v60_v23 = vpop.xlane.xlu1 %59 }
 0x158   :  { %131 = vlog2.f32 %v60_v23 }
 0x15b   :  { %v72_v27 = vpop.xlane.xlu1 %71 }
 0x15e   :  { %v130_v24 = vpop.eup %129 }
 0x15f   :  { %v62_v26 = vmul.f32 0.6931472, %v130_v24  ;;  %v80_v34 = vpop.xlane.xlu1 %79 }
 0x161   :  { %v81_v28 = vadd.f32 %v62_v26, %v45_v8 }
 0x162   :  { %v132_v29 = vpop.eup %131 }
 0x163   :  { %v64_v30 = vmul.f32 0.6931472, %v132_v29  ;;  %v83_v31 = vmul.f32 %v81_v28, %v69_v25 }
 0x165   :  { %v82_v33 = vadd.f32 %v64_v30, %v48_v11  ;;  %v85_v36 = vsub.f32 %v83_v31, %v77_v32 }
 0x167   :  { %v84_v35 = vmul.f32 %v82_v33, %v72_v27  ;;  %v88_v38 = vsel %vm87_vm1, %v85_v36, 0.0 }
 0x169   :  { %v86_v37 = vsub.f32 %v84_v35, %v80_v34 }
 0x16b   :  { %v89_v39 = vsel %vm87_vm1, %v86_v37, 0.0 }
 0x16c   :  { %v90_v40 = vadd.f32 %v89_v39, %v88_v38 }
 0x16e   :  { %91 = vadd.xlane.f32.xlu0 %v90_v40 }
 0x1fb   :  { %v92_v41 = vpop.xlane.xlu0 %91 }
 0x1fc   :  { %v93_v42 = vrot.slane %v92_v41, 4 }
 0x1fe   :  { %v94_v43 = vadd.f32 %v93_v42, %v92_v41 }
 0x200   :  { %v95_v44 = vrot.slane %v94_v43, 2 }
 0x202   :  { %v96_v45 = vadd.f32 %v95_v44, %v94_v43 }
 0x204   :  { %v97_v46 = vrot.slane %v96_v45, 1 }
 0x206   :  { %v98_v47 = vadd.f32 %v97_v46, %v96_v45 }
 0x208   :  { %118 = vpush %v98_v47 }
 0x239   :  { %s119_s7 = spop %118 }
 0x23a   :  { %v100_v48 = vstv %s119_s7 }
 0x23b   :  { %101 = vst [vmem:[#allocation7] sm:$0xff] %v100_v48 }
 0x23c   :  { %188 = shalt.err (!%p185_p6)
}
 0x23d   :  { %s189_s11 = scalar_lea.hbm %s271_s2, 128 }
 0x23e   :  { %p190_p7 = scmp.ne.s32.totalorder %s271_s2, %s189_s11  ;;  %p193_p8 = scmp.lt.u32.totalorder %s189_s11, %s271_s2 }
 0x240   :  { %p195_p9 = pnand %p193_p8, %p190_p7 }
 0x242   :  { %198 = shalt.err (!%p195_p9)
}
 0x243   :  { %111 = dma.vmem_to_hbm [thread:$0]  %s109_s6, 128, %s271_s2, [#allocation4]  }
 0x244   :  { %203 = dma.done.wait [#allocation4], 128  }
 0x245   :  { %204 = vsyncadd [#allocation4], 4294967168 }
 0x246   :  { %115 = vsyncpa [#allocation3], 1 }
 0x247   :  { %116 = vsyncpa [#allocation6], 1 }
 0x248   :  { %117 = vsyncpa [#allocation4], 1 }

</bundles_post_ra>
